<compile_context>
chip_gen: v5e
topology: v5e:2x2
jax: 0.10.0
libtpu: 0.0.40
codegen_flags: <defaults>
</compile_context>

<pallas_src>
import jax
import jax.numpy as jnp
from jax.experimental import pallas as pl
from jax.experimental.pallas import tpu as pltpu

_EPS = 1e-8


def _make_kernel(n_rows: int):
    def kernel(y_true_ref, y_pred_ref, out_ref, acc_ref):
        p = pl.program_id(0)
        t = pl.program_id(1)
        nt = pl.num_programs(1)

        @pl.when(t == 0)
        def _init():
            acc_ref[...] = jnp.zeros_like(acc_ref)

        yt = y_true_ref[...].astype(jnp.float32)
        yp = y_pred_ref[...].astype(jnp.float32)

        # Per-row reductions over the feature axis (XLU; keep off the MXU).
        dot = jnp.sum(yp * yt, axis=1, keepdims=True)   # (tn, 1)
        sp = jnp.sum(yp * yp, axis=1, keepdims=True)    # (tn, 1)
        st = jnp.sum(yt * yt, axis=1, keepdims=True)    # (tn, 1)

        # cos = dot / (max(||yp||,eps) * max(||yt||,eps))
        #     = dot * rsqrt(max(sp,eps^2) * max(st,eps^2))   (one EUP rsqrt)
        eps2 = jnp.float32(_EPS * _EPS)
        cos = dot * jax.lax.rsqrt(jnp.maximum(sp, eps2) * jnp.maximum(st, eps2))

        # Mask rows past the true batch (partial tail block / clamped dup block).
        tn = y_true_ref.shape[0]
        block = p * nt + t                               # logical row-block id
        rows = block * tn + jax.lax.broadcasted_iota(jnp.int32, (tn, 1), 0)
        cos = jnp.where(rows < n_rows, cos, 0.0)

        acc_ref[...] += jnp.sum(cos, axis=0, keepdims=True)

        @pl.when(t == nt - 1)
        def _finalize():
            # Lane-dense store of this chunk's partial sum; wrapper reads [p,0,0].
            out_ref[...] = jnp.broadcast_to(acc_ref[...], out_ref.shape)

    return kernel


def cosine_similarity_loss(y_true, y_pred, *, block_rows=None,
                           vmem_budget_bytes=24 * 1024 * 1024):
    assert y_true.shape == y_pred.shape and y_true.ndim == 2
    n, d = y_true.shape

    # ---- pick the batch tile: biggest that keeps 2 inputs x 2 pipeline
    # buffers under the VMEM budget (conservative for v7x's 64 MiB / TC). ----
    itemsize = max(y_true.dtype.itemsize, y_pred.dtype.itemsize)
    bytes_per_row = 2 * 2 * d * itemsize
    if block_rows is None:
        tn = int(min(1024, max(8, vmem_budget_bytes // max(bytes_per_row, 1))))
        tn -= tn % 8                        # sublane-aligned row tile
        tn = max(tn, 8)
    else:
        tn = int(block_rows)
    if tn >= n:
        tn = n                              # full-extent block is always legal
    # TODO(synk): for very large D, add an inner "arbitrary" grid axis over the
    # feature dim with per-row dot/sp/st partials carried in (tn, 1) scratch.

    nb = pl.cdiv(n, tn)                     # total row-blocks
    P = 2 if nb >= 2 else 1                 # megacore split (v7x); serial elsewhere
    T = pl.cdiv(nb, P)                      # row-blocks per parallel chunk

    def in_index_map(p, t):
        # Clamp so the (possibly empty) tail of the last chunk never issues a
        # fully out-of-bounds DMA; masked rows contribute zero anyway.
        return (jnp.minimum(p * T + t, nb - 1), 0)

    tile_bytes = 2 * 2 * tn * d * itemsize
    vmem_limit = int(min(max(tile_bytes + (8 << 20), 32 << 20), 64 << 20))

    out = pl.pallas_call(
        _make_kernel(n),
        out_shape=jax.ShapeDtypeStruct((P, 8, 128), jnp.float32),
        grid_spec=pltpu.PrefetchScalarGridSpec(
            num_scalar_prefetch=0,
            grid=(P, T),
            in_specs=[
                pl.BlockSpec((tn, d), in_index_map),
                pl.BlockSpec((tn, d), in_index_map),
            ],
            out_specs=pl.BlockSpec((1, 8, 128), lambda p, t: (p, 0, 0)),
            scratch_shapes=[pltpu.VMEM((1, 1), jnp.float32)],
        ),
        compiler_params=pltpu.CompilerParams(
            dimension_semantics=("parallel", "arbitrary"),
            vmem_limit_bytes=vmem_limit,
        ),
    )(y_true, y_pred)

    loss = jnp.sum(out[:, 0, 0]) / n
    return loss.astype(jnp.result_type(y_true.dtype, y_pred.dtype))


def _reference_loss(y_true, y_pred):
    yt = y_true.astype(jnp.float32)
    yp = y_pred.astype(jnp.float32)
    dot = jnp.sum(yp * yt, axis=1)
    denom = (jnp.maximum(jnp.linalg.norm(yp, axis=1), _EPS)
             * jnp.maximum(jnp.linalg.norm(yt, axis=1), _EPS))
    return jnp.mean(dot / denom)


if __name__ == "__main__":
    key = jax.random.PRNGKey(0)
    k1, k2, k3, k4 = jax.random.split(key, 4)

    # Case 1: tiny (batch=8, features=32) — single full-extent block.
    yt1 = jax.random.normal(k1, (8, 32), dtype=jnp.float32)
    yp1 = jax.random.normal(k2, (8, 32), dtype=jnp.float32)
    loss1 = cosine_similarity_loss(yt1, yp1)
    jax.block_until_ready(loss1)
    ref1 = _reference_loss(yt1, yp1)
    assert jnp.allclose(loss1, ref1, atol=1e-5, rtol=1e-5), (loss1, ref1)

    # Case 2: exercises batch tiling, the parallel chunk split, a partial tail
    # block and a clamped (masked-out) duplicate block.
    yt2 = jax.random.normal(k3, (300, 256), dtype=jnp.float32)
    yp2 = jax.random.normal(k4, (300, 256), dtype=jnp.float32)
    loss2 = cosine_similarity_loss(yt2, yp2, block_rows=64)
    jax.block_until_ready(loss2)
    ref2 = _reference_loss(yt2, yp2)
    assert jnp.allclose(loss2, ref2, atol=1e-5, rtol=1e-5), (loss2, ref2)

    print("KERNEL_OK")
</pallas_src>

<mosaic_0001>
module attributes {stable_mosaic.version = 11 : i64} {
  func.func @kernel(%arg0: i32, %arg1: i32, %arg2: memref<8x32xf32, #tpu.memory_space<vmem>>, %arg3: memref<8x32xf32, #tpu.memory_space<vmem>>, %arg4: memref<1x8x128xf32, #tpu.memory_space<vmem>>, %arg5: memref<1x1xf32, #tpu.memory_space<vmem>>) attributes {dimension_semantics = [#tpu.dimension_semantics<parallel>, #tpu.dimension_semantics<arbitrary>], iteration_bounds = array<i64: 1, 1>, scalar_prefetch = 0 : i64, scratch_operands = 1 : i64, tpu.core_type = #tpu.core_type<tc>, window_params = [{transform_indices = @transform_0, window_bounds = array<i64: 8, 32>}, {transform_indices = @transform_1, window_bounds = array<i64: 8, 32>}, {transform_indices = @transform_2, window_bounds = array<i64: 1, 8, 128>}]} {
    %c0_i32 = arith.constant 0 : i32
    %0 = arith.cmpi eq, %arg1, %c0_i32 : i32
    %1 = arith.extui %0 : i1 to i32
    %c0_i32_0 = arith.constant 0 : i32
    %2 = arith.cmpi ne, %1, %c0_i32_0 : i32
    scf.if %2 {
      %cst_17 = arith.constant 0.000000e+00 : f32
      %39 = vector.broadcast %cst_17 : f32 to vector<1x1xf32>
      %c0_18 = arith.constant 0 : index
      %c0_19 = arith.constant 0 : index
      %40 = vector.load %arg5[%c0_18, %c0_19] : memref<1x1xf32, #tpu.memory_space<vmem>>, vector<1x1xf32>
      tpu.vector_store %arg5[%c0_18, %c0_19], %39 {strides = array<i32>} : memref<1x1xf32, #tpu.memory_space<vmem>>, vector<1x1xf32>,
    } else {
    }
    %c0 = arith.constant 0 : index
    %c0_1 = arith.constant 0 : index
    %3 = vector.load %arg2[%c0, %c0_1] : memref<8x32xf32, #tpu.memory_space<vmem>>, vector<8x32xf32>
    %c0_2 = arith.constant 0 : index
    %c0_3 = arith.constant 0 : index
    %4 = vector.load %arg3[%c0_2, %c0_3] : memref<8x32xf32, #tpu.memory_space<vmem>>, vector<8x32xf32>
    %5 = arith.mulf %4, %3 : vector<8x32xf32>
    %cst = arith.constant dense<0.000000e+00> : vector<8xf32>
    %6 = vector.multi_reduction <add>, %5, %cst [1] : vector<8x32xf32> to vector<8xf32>
    %7 = vector.shape_cast %6 : vector<8xf32> to vector<8x1xf32>
    %8 = arith.mulf %4, %4 : vector<8x32xf32>
    %cst_4 = arith.constant dense<0.000000e+00> : vector<8xf32>
    %9 = vector.multi_reduction <add>, %8, %cst_4 [1] : vector<8x32xf32> to vector<8xf32>
    %10 = vector.shape_cast %9 : vector<8xf32> to vector<8x1xf32>
    %11 = arith.mulf %3, %3 : vector<8x32xf32>
    %cst_5 = arith.constant dense<0.000000e+00> : vector<8xf32>
    %12 = vector.multi_reduction <add>, %11, %cst_5 [1] : vector<8x32xf32> to vector<8xf32>
    %13 = vector.shape_cast %12 : vector<8xf32> to vector<8x1xf32>
    %cst_6 = arith.constant 1.000000e-16 : f32
    %14 = vector.broadcast %cst_6 : f32 to vector<8x1xf32>
    %15 = arith.maximumf %10, %14 : vector<8x1xf32>
    %cst_7 = arith.constant 1.000000e-16 : f32
    %16 = vector.broadcast %cst_7 : f32 to vector<8x1xf32>
    %17 = arith.maximumf %13, %16 : vector<8x1xf32>
    %18 = arith.mulf %15, %17 : vector<8x1xf32>
    %19 = math.rsqrt %18 : vector<8x1xf32>
    %20 = arith.mulf %7, %19 : vector<8x1xf32>
    %c1_i32 = arith.constant 1 : i32
    %21 = arith.muli %arg0, %c1_i32 : i32
    %22 = arith.addi %21, %arg1 : i32
    %c8_i32 = arith.constant 8 : i32
    %23 = arith.muli %22, %c8_i32 : i32
    %24 = tpu.iota {dimensions = array<i32: 0>} : vector<8x1xi32>
    %25 = vector.broadcast %23 : i32 to vector<8x1xi32>
    %26 = arith.addi %25, %24 : vector<8x1xi32>
    %c8_i32_8 = arith.constant 8 : i32
    %27 = vector.broadcast %c8_i32_8 : i32 to vector<8x1xi32>
    %28 = arith.cmpi slt, %26, %27 : vector<8x1xi32>
    %cst_9 = arith.constant 0.000000e+00 : f32
    %29 = vector.broadcast %cst_9 : f32 to vector<8x1xf32>
    %30 = arith.select %28, %20, %29 : vector<8x1xi1>, vector<8x1xf32>
    %c0_10 = arith.constant 0 : index
    %c0_11 = arith.constant 0 : index
    %31 = vector.load %arg5[%c0_10, %c0_11] : memref<1x1xf32, #tpu.memory_space<vmem>>, vector<1x1xf32>
    %cst_12 = arith.constant dense<0.000000e+00> : vector<1xf32>
    %32 = vector.multi_reduction <add>, %30, %cst_12 [0] : vector<8x1xf32> to vector<1xf32>
    %33 = vector.shape_cast %32 : vector<1xf32> to vector<1x1xf32>
    %34 = arith.addf %31, %33 : vector<1x1xf32>
    %c0_13 = arith.constant 0 : index
    %c0_14 = arith.constant 0 : index
    %35 = vector.load %arg5[%c0_13, %c0_14] : memref<1x1xf32, #tpu.memory_space<vmem>>, vector<1x1xf32>
    tpu.vector_store %arg5[%c0_13, %c0_14], %34 {strides = array<i32>} : memref<1x1xf32, #tpu.memory_space<vmem>>, vector<1x1xf32>,
    %c0_i32_15 = arith.constant 0 : i32
    %36 = arith.cmpi eq, %arg1, %c0_i32_15 : i32
    %37 = arith.extui %36 : i1 to i32
    %c0_i32_16 = arith.constant 0 : i32
    %38 = arith.cmpi ne, %37, %c0_i32_16 : i32
    scf.if %38 {
      %c0_17 = arith.constant 0 : index
      %c0_18 = arith.constant 0 : index
      %39 = vector.load %arg5[%c0_17, %c0_18] : memref<1x1xf32, #tpu.memory_space<vmem>>, vector<1x1xf32>
      %40 = vector.shape_cast %39 : vector<1x1xf32> to vector<1x1x1xf32>
      %41 = vector.broadcast %40 : vector<1x1x1xf32> to vector<1x8x128xf32>
      %c0_19 = arith.constant 0 : index
      %c0_20 = arith.constant 0 : index
      %c0_21 = arith.constant 0 : index
      %42 = vector.load %arg4[%c0_19, %c0_20, %c0_21] : memref<1x8x128xf32, #tpu.memory_space<vmem>>, vector<1x8x128xf32>
      tpu.vector_store %arg4[%c0_19, %c0_20, %c0_21], %41 {strides = array<i32>} : memref<1x8x128xf32, #tpu.memory_space<vmem>>, vector<1x8x128xf32>,
    } else {
    }
    return
  }
  func.func @transform_0(%arg0: i32, %arg1: i32) -> (i32, i32) {
    %c1_i32 = arith.constant 1 : i32
    %0 = arith.muli %arg0, %c1_i32 : i32
    %1 = arith.addi %0, %arg1 : i32
    %c0_i32 = arith.constant 0 : i32
    %2 = arith.minsi %1, %c0_i32 : i32
    %c0_i32_0 = arith.constant 0 : i32
    %c0_i32_1 = arith.constant 0 : i32
    return %2, %c0_i32_0 : i32, i32
  }
  func.func @transform_1(%arg0: i32, %arg1: i32) -> (i32, i32) {
    %c1_i32 = arith.constant 1 : i32
    %0 = arith.muli %arg0, %c1_i32 : i32
    %1 = arith.addi %0, %arg1 : i32
    %c0_i32 = arith.constant 0 : i32
    %2 = arith.minsi %1, %c0_i32 : i32
    %c0_i32_0 = arith.constant 0 : i32
    %c0_i32_1 = arith.constant 0 : i32
    return %2, %c0_i32_0 : i32, i32
  }
  func.func @transform_2(%arg0: i32, %arg1: i32) -> (i32, i32, i32) {
    %c0_i32 = arith.constant 0 : i32
    %c0_i32_0 = arith.constant 0 : i32
    %c0_i32_1 = arith.constant 0 : i32
    return %arg0, %c0_i32, %c0_i32_0 : i32, i32, i32
  }
}

</mosaic_0001>

<bundles_post_ra>
// kernel: tpu_custom_call.1
= control target key start
LH: loop header
LB: loop body
LE: loop exit
PB: predicated region body
PF: predicated region fallthrough
CT: control target
= control target key end

     0   :  { %7 = vsyncpa [#allocation4], 0  ;;  %s261_s0 = inlined_call_operand.hbm [shape: f32[8,32], index: 0, kind: input, shape index: {}]   ;;  %s262_s1 = inlined_call_operand.hbm [shape: f32[8,32], index: 1, kind: input, shape index: {}]   ;;  %s263_s2 = inlined_call_operand.hbm [shape: f32[1,8,128], index: 2, kind: output, shape index: {}]  }
   0x1   :  { %8 = vsyncpa [#allocation7], 0 }
   0x2   :  { %9 = vsyncpa [#allocation5], 0  ;;  %s20_s11 = sshll.u32 %s261_s0, 4  ;;  %s230_s12 = smov [#allocation3]   ;;  %s21_s11 = int_to_ptr.hbm [resolvable:$true] %s20_s11 }
   0x3   :  { %s22_s13 = sshll.u32 %s230_s12, 4  ;;  %s36_s16 = sshll.u32 %s262_s1, 4  ;;  %s23_s13 = int_to_ptr.vmem [resolvable:$true] %s22_s13  ;;  %s37_s16 = int_to_ptr.hbm [resolvable:$true] %s36_s16 }
   0x4   :  { %25 = dma.hbm_to_vmem [thread:$0]  %s21_s11, 128, %s23_s13, [#allocation4]  }
   0x5   :  { %s231_s17 = smov [#allocation6]  }
   0x6   :  { %s38_s18 = sshll.u32 %s231_s17, 4  ;;  %s39_s18 = int_to_ptr.vmem [resolvable:$true] %s38_s18 }
   0x7   :  { %41 = dma.hbm_to_vmem [thread:$0]  %s37_s16, 128, %s39_s18, [#allocation7]  }
   0x8   :  { %224 = dma.done.wait [#allocation4], 128  }
   0x9   :  { %225 = vsyncadd [#allocation4], 4294967168 }
   0xa   :  { %226 = dma.done.wait [#allocation7], 128  }
   0xb   :  { %227 = vsyncadd [#allocation7], 4294967168  ;;  %vm60_vm0 = vcmask 0   ;;  %v232_v0 = vmov 0.0   ;;  %v63_v1 = vld [vmem:[#allocation6] sm:$0xff]  ;;  %vm65_vm1 = vcmask 261120  }
   0xc   :  { %61 = vst.msk [vmem:[#allocation2] sm:$0x1] %vm60_vm0, %v232_v0  ;;  %v62_v2 = vld [vmem:[#allocation3] sm:$0xff]  ;;  %v69_v3 = vmul.f32 %v63_v1, %v63_v1  ;;  %v233_v14 = vmov 0   ;;  %s234_s0 = smov [#allocation8]   ;;  %s127_s21 = sshll.u32 %s263_s2, 4  ;;  %s128_s21 = int_to_ptr.hbm [resolvable:$true] %s127_s21 }
   0xd   :  { %v64_v4 = vmul.f32 %v63_v1, %v62_v2  ;;  %v73_v7 = vmul.f32 %v62_v2, %v62_v2  ;;  %147 = vset.pattern.permute.xlu1 %v233_v14  ;;  %148 = vset.pattern.permute.xlu0 %v233_v14  ;;  %s125_s1 = sshll.u32 %s234_s0, 4  ;;  %s126_s1 = int_to_ptr.vmem [resolvable:$true] %s125_s1 }
   0xe   :  { %v70_v5 = vsel %vm65_vm1, %v69_v3, 0.0 }
   0xf   :  { %v66_v6 = vsel %vm65_vm1, %v64_v4, 0.0  ;;  %71 = vadd.xlane.f32.xlu0 %v70_v5  ;;  %v74_v8 = vsel %vm65_vm1, %v73_v7, 0.0 }
  0x10   :  { %67 = vadd.xlane.f32.xlu1 %v66_v6 }
  0x13   :  { %v99_v29 = vld [vmem:[#allocation2] sm:$0x1] }
  0x17   :  { %75 = vadd.xlane.f32.xlu0 %v74_v8 }
  0x82   :  { %v72_v9 = vpop.xlane.xlu0 %71 }
  0x83   :  { %v77_v11 = vmax.f32 %v72_v9, 1e-16  ;;  %v68_v21 = vpop.xlane.xlu1 %67 }
  0x8a   :  { %v76_v10 = vpop.xlane.xlu0 %75 }
  0x8b   :  { %v78_v12 = vmax.f32 %v76_v10, 1e-16 }
  0x8d   :  { %v79_v13 = vmul.f32 %v78_v12, %v77_v11 }
  0x8f   :  { %150 = vrsqrt.f32 %v79_v13  ;;  %vm86_vm3 = vweird.f32 %v79_v13 }
  0x95   :  { %v151_v15 = vpop.eup %150 }
  0x96   :  { %v81_v16 = vmul.f32 %v151_v15, %v79_v13  ;;  %vm87_vm2 = vweird.f32 %v151_v15 }
  0x97   :  { %vm88_vm4 = vmor %vm86_vm3, %vm87_vm2 }
  0x98   :  { %v82_v17 = vmul.f32 %v151_v15, %v81_v16 }
  0x9a   :  { %v83_v18 = vmul.f32 0.5, %v82_v17 }
  0x9c   :  { %v84_v19 = vsub.f32 1.5, %v83_v18 }
  0x9e   :  { %v85_v20 = vmul.f32 %v151_v15, %v84_v19 }
  0xa0   :  { %v89_v22 = vsel %vm88_vm4, %v151_v15, %v85_v20 }
  0xa1   :  { %v90_v23 = vmul.f32 %v89_v22, %v68_v21 }
  0xa3   :  { %v100_v24 = vrot.slane %v90_v23, 4 }
  0xa5   :  { %v101_v25 = vadd.f32 %v100_v24, %v90_v23 }
  0xa7   :  { %v102_v26 = vrot.slane %v101_v25, 2 }
  0xa9   :  { %v103_v27 = vadd.f32 %v102_v26, %v101_v25 }
  0xab   :  { %v104_v28 = vrot.slane %v103_v27, 1 }
  0xad   :  { %v105_v30 = vadd.f32 %v104_v28, %v103_v27 }
  0xaf   :  { %v106_v31 = vadd.f32 %v105_v30, %v99_v29 }
  0xb1   :  { %108 = vst.msk [vmem:[#allocation2] sm:$0x1] %vm60_vm0, %v106_v31 }
  0xb8   :  { %v149_v32 = vld [vmem:[#allocation2] ss:$0 sm:$0xff] }
  0xb9   :  { %116 = vperm.xlu1 %147, %v149_v32  }
 0x12b   :  { %v117_v33 = vpop.permute.xlu1 %116 }
 0x12c   :  { %119 = vst [vmem:[#allocation8] sm:$0xff] %v117_v33 }
 0x12d   :  { %130 = dma.vmem_to_hbm [thread:$0]  %s126_s1, 128, %s128_s21, [#allocation5]  }
 0x12e   :  { %228 = dma.done.wait [#allocation5], 128  }
 0x12f   :  { %229 = vsyncadd [#allocation5], 4294967168 }
 0x130   :  { %135 = vsyncpa [#allocation4], 1 }
 0x131   :  { %136 = vsyncpa [#allocation7], 1 }
 0x132   :  { %137 = vsyncpa [#allocation5], 1 }

</bundles_post_ra>
